<compile_context>
chip_gen: v6e
topology: v6e:2x2x1
jax: 0.10.0
libtpu: 0.0.40
codegen_flags: <defaults>
</compile_context>

<pallas_src>
import functools

import jax
import jax.numpy as jnp
from jax.experimental import pallas as pl
from jax.experimental.pallas import tpu as pltpu

EPS = 1e-6  # default rms_norm_eps


def _pick(dim, target):
    """Largest tile = min(dim, target); shapes in this script divide evenly."""
    if dim <= target:
        return dim
    assert dim % target == 0, (dim, target)
    return target


# ---------------------------------------------------------------------------
# 1) fused (residual add +) input RMSNorm + QKV projection   grid = (M, N)
# ---------------------------------------------------------------------------
def _norm_qkv_kernel(*refs, eps, has_residual):
    if has_residual:
        (x_ref, res_ref, wln_ref, w_ref, o_ref, res_out_ref, xn_ref) = refs
    else:
        (x_ref, wln_ref, w_ref, o_ref, xn_ref) = refs
        res_ref = res_out_ref = None

    # Norm + residual write only once per row tile (n == 0); xn persists in
    # a bf16 scratch across the N axis.
    @pl.when(pl.program_id(1) == 0)
    def _():
        x = x_ref[...].astype(jnp.float32)
        if has_residual:
            x = x + res_ref[...].astype(jnp.float32)
            res_out_ref[...] = x.astype(res_out_ref.dtype)
        var = jnp.mean(x * x, axis=-1, keepdims=True)
        xn = x * jax.lax.rsqrt(var + eps) * wln_ref[...].astype(jnp.float32)
        xn_ref[...] = xn.astype(xn_ref.dtype)

    # Full-K contraction: bf16 x bf16 -> f32, written straight to the output.
    o_ref[...] = jnp.dot(xn_ref[...], w_ref[...],
                         preferred_element_type=jnp.float32).astype(o_ref.dtype)


def fused_norm_qkv(x, residual, ln_w, w_qkv, *, eps=EPS, tm_t=128, tn_t=256):
    T, H = x.shape
    _, N = w_qkv.shape
    tm, tn = _pick(T, tm_t), _pick(N, tn_t)
    has_res = residual is not None
    w_qkv = w_qkv.astype(jnp.bfloat16)

    in_specs = [pl.BlockSpec((tm, H), lambda i, n: (i, 0))]
    inputs = [x]
    if has_res:
        in_specs.append(pl.BlockSpec((tm, H), lambda i, n: (i, 0)))
        inputs.append(residual)
    in_specs += [
        pl.BlockSpec((1, H), lambda i, n: (0, 0)),
        pl.BlockSpec((H, tn), lambda i, n: (0, n)),
    ]
    inputs += [ln_w.reshape(1, H), w_qkv]

    out_shapes = [jax.ShapeDtypeStruct((T, N), x.dtype)]
    out_specs = [pl.BlockSpec((tm, tn), lambda i, n: (i, n))]
    if has_res:
        out_shapes.append(jax.ShapeDtypeStruct((T, H), x.dtype))
        out_specs.append(pl.BlockSpec((tm, H), lambda i, n: (i, 0)))

    kernel = functools.partial(_norm_qkv_kernel, eps=eps, has_residual=has_res)
    return pl.pallas_call(
        kernel,
        out_shape=tuple(out_shapes),
        grid_spec=pltpu.PrefetchScalarGridSpec(
            num_scalar_prefetch=0,
            grid=(T // tm, N // tn),
            in_specs=in_specs,
            out_specs=tuple(out_specs),
            scratch_shapes=[pltpu.VMEM((tm, H), jnp.bfloat16)],
        ),
        compiler_params=pltpu.CompilerParams(
            dimension_semantics=("parallel", "arbitrary"),
            vmem_limit_bytes=48 * 1024 * 1024),
    )(*inputs)


# ---------------------------------------------------------------------------
# 2) fused q + k per-head RMSNorm + neox RoPE (single pallas_call)
#    - q / k column slabs are read directly from the qkv tensor via BlockSpecs
#    - rotate-half done with pltpu.roll (XLU slot, no concat copy)
#    - softmax scale pre-folded into the q_norm weight on the host
#    - outputs are bf16, ready for the attention MXU dots
# ---------------------------------------------------------------------------
def _qk_norm_rope_kernel(q_ref, k_ref, qw_ref, kw_ref, cos_ref, sin_ref,
                         qo_ref, ko_ref, *, eps, d, nh, nkv):
    cos = cos_ref[...]                                     # (tm, D) f32
    sin = sin_ref[...]                                     # sign pre-folded

    def norm_rope(x_ref, o_ref, w_ref, n):
        w = w_ref[...].astype(jnp.float32)                 # (1, D)
        for h in range(n):                                 # static unroll
            x = x_ref[:, h * d:(h + 1) * d].astype(jnp.float32)   # (tm, D)
            var = jnp.mean(x * x, axis=-1, keepdims=True)
            x = x * jax.lax.rsqrt(var + eps) * w
            xr = pltpu.roll(x, shift=d // 2, axis=1)       # rotate-half (XLU)
            o_ref[:, h * d:(h + 1) * d] = (x * cos + xr * sin).astype(o_ref.dtype)

    norm_rope(q_ref, qo_ref, qw_ref, nh)
    norm_rope(k_ref, ko_ref, kw_ref, nkv)


def qk_norm_rope(qkv, qw_scaled, kw, cos_full, sin_signed, *,
                 num_heads, num_kv_heads, head_dim, eps=EPS, tm_t=128):
    T = qkv.shape[0]
    D = head_dim
    rep = num_heads // num_kv_heads
    q_w, k_w = num_heads * D, num_kv_heads * D
    tm = _pick(T, tm_t)
    kernel = functools.partial(_qk_norm_rope_kernel, eps=eps, d=D,
                               nh=num_heads, nkv=num_kv_heads)
    return pl.pallas_call(
        kernel,
        out_shape=(jax.ShapeDtypeStruct((T, q_w), jnp.bfloat16),
                   jax.ShapeDtypeStruct((T, k_w), jnp.bfloat16)),
        grid_spec=pltpu.PrefetchScalarGridSpec(
            num_scalar_prefetch=0,
            grid=(T // tm,),
            in_specs=[
                pl.BlockSpec((tm, q_w), lambda i: (i, 0)),      # q slab of qkv
                pl.BlockSpec((tm, k_w), lambda i: (i, rep)),    # k slab of qkv
                pl.BlockSpec((1, D), lambda i: (0, 0)),
                pl.BlockSpec((1, D), lambda i: (0, 0)),
                pl.BlockSpec((tm, D), lambda i: (i, 0)),
                pl.BlockSpec((tm, D), lambda i: (i, 0)),
            ],
            out_specs=(pl.BlockSpec((tm, q_w), lambda i: (i, 0)),
                       pl.BlockSpec((tm, k_w), lambda i: (i, 0))),
        ),
        compiler_params=pltpu.CompilerParams(dimension_semantics=("parallel",)),
    )(qkv, qkv, qw_scaled.reshape(1, D), kw.reshape(1, D), cos_full, sin_signed)


# ---------------------------------------------------------------------------
# 3) flash-style causal GQA attention (single prefill sequence)
#    grid = (kv_group, q_tile, kv_tile); all `rep` query heads of a group are
#    handled per invocation so K/V tiles are fetched once per group.
# ---------------------------------------------------------------------------
def _flash_attn_kernel(q_ref, k_ref, v_ref, o_ref, m_ref, l_ref, acc_ref,
                       *, tq, tkv, rep, d):
    i = pl.program_id(1)   # query tile
    j = pl.program_id(2)   # kv tile (trailing "arbitrary" axis)

    @pl.when(j == 0)
    def _():
        m_ref[...] = jnp.full_like(m_ref, -1e30)
        l_ref[...] = jnp.zeros_like(l_ref)
        acc_ref[...] = jnp.zeros_like(acc_ref)

    q_start = i * tq
    needed = j * tkv <= q_start + (tq - 1)        # at least one valid column
    full = (j * tkv + (tkv - 1)) <= q_start       # fully below the diagonal

    def process(masked):
        k = k_ref[...].astype(jnp.bfloat16)       # (tkv, D)
        v = v_ref[...].astype(jnp.bfloat16)       # (tkv, D)
        if masked:
            row = q_start + jax.lax.broadcasted_iota(jnp.int32, (tq, tkv), 0)
            col = j * tkv + jax.lax.broadcasted_iota(jnp.int32, (tq, tkv), 1)
            keep = col <= row
        for r in range(rep):                      # static unroll over GQA group
            q_r = q_ref[:, r * d:(r + 1) * d].astype(jnp.bfloat16)
            s = jax.lax.dot_general(
                q_r, k, (((1,), (1,)), ((), ())),
                preferred_element_type=jnp.float32)        # (tq, tkv)
            if masked:
                s = jnp.where(keep, s, -1e30)
            m_prev = m_ref[r]
            m_new = jnp.maximum(m_prev, jnp.max(s, axis=-1, keepdims=True))
            alpha = jnp.exp(m_prev - m_new)
            p = jnp.exp(s - m_new)
            l_ref[r] = alpha * l_ref[r] + jnp.sum(p, axis=-1, keepdims=True)
            acc_ref[r] = alpha * acc_ref[r] + jnp.dot(
                p.astype(jnp.bfloat16), v, preferred_element_type=jnp.float32)
            m_ref[r] = m_new

    @pl.when(full)
    def _():
        process(masked=False)          # interior tile: no mask construction

    @pl.when(needed & jnp.logical_not(full))
    def _():
        process(masked=True)           # diagonal-straddling tile only

    @pl.when(j == pl.num_programs(2) - 1)
    def _():
        for r in range(rep):
            o_ref[:, r * d:(r + 1) * d] = (
                acc_ref[r] * pl.reciprocal(l_ref[r], approx=True)
            ).astype(o_ref.dtype)


def flash_causal_attention(q, k, qkv, num_heads, num_kv_heads, head_dim,
                           *, tq_t=128, tkv_t=128):
    """q: (T, NH*D) bf16, k: (T, NKV*D) bf16, qkv: (T, (NH+2NKV)*D) (v slab).

    Softmax scale is already folded into q.  Returns bf16 (T, NH*D).
    """
    T = q.shape[0]
    D = head_dim
    rep = num_heads // num_kv_heads
    tq, tkv = _pick(T, tq_t), _pick(T, tkv_t)
    v_off = num_heads + num_kv_heads          # v column-block offset inside qkv

    def kv_block(i, j):
        # Clamp to the last causally-needed kv tile: skipped upper-triangular
        # iterations revisit the previous block, so no new K/V DMA is issued.
        return jnp.minimum(j, (i * tq + tq - 1) // tkv)

    kernel = functools.partial(_flash_attn_kernel, tq=tq, tkv=tkv, rep=rep, d=D)
    return pl.pallas_call(
        kernel,
        out_shape=jax.ShapeDtypeStruct((T, num_heads * D), jnp.bfloat16),
        grid_spec=pltpu.PrefetchScalarGridSpec(
            num_scalar_prefetch=0,
            grid=(num_kv_heads, T // tq, T // tkv),
            in_specs=[
                pl.BlockSpec((tq, rep * D), lambda g, i, j: (i, g)),
                pl.BlockSpec((tkv, D), lambda g, i, j: (kv_block(i, j), g)),
                pl.BlockSpec((tkv, D),
                             lambda g, i, j: (kv_block(i, j), v_off + g)),
            ],
            out_specs=pl.BlockSpec((tq, rep * D), lambda g, i, j: (i, g)),
            scratch_shapes=[pltpu.VMEM((rep, tq, 1), jnp.float32),
                            pltpu.VMEM((rep, tq, 1), jnp.float32),
                            pltpu.VMEM((rep, tq, D), jnp.float32)],
        ),
        compiler_params=pltpu.CompilerParams(
            dimension_semantics=("parallel", "parallel", "arbitrary")),
    )(q, k, qkv)


# ---------------------------------------------------------------------------
# 4) o_proj: full-K tiled matmul, grid (M, N), bf16 operands, f32 accumulate
# ---------------------------------------------------------------------------
def _matmul_kernel(x_ref, w_ref, o_ref):
    o_ref[...] = jnp.dot(x_ref[...].astype(w_ref.dtype), w_ref[...],
                         preferred_element_type=jnp.float32).astype(o_ref.dtype)


def matmul(x, w, *, out_dtype=None, tm_t=128, tn_t=256):
    M, K = x.shape
    K2, N = w.shape
    assert K == K2
    w = w.astype(jnp.bfloat16)
    out_dtype = x.dtype if out_dtype is None else out_dtype
    tm, tn = _pick(M, tm_t), _pick(N, tn_t)
    return pl.pallas_call(
        _matmul_kernel,
        out_shape=jax.ShapeDtypeStruct((M, N), out_dtype),
        grid_spec=pltpu.PrefetchScalarGridSpec(
            num_scalar_prefetch=0,
            grid=(M // tm, N // tn),
            in_specs=[pl.BlockSpec((tm, K), lambda i, j: (i, 0)),
                      pl.BlockSpec((K, tn), lambda i, j: (0, j))],
            out_specs=pl.BlockSpec((tm, tn), lambda i, j: (i, j)),
        ),
        compiler_params=pltpu.CompilerParams(
            dimension_semantics=("parallel", "parallel")),
    )(x, w)


# ---------------------------------------------------------------------------
# 5) fused residual-add + post_attention RMSNorm + Qwen3MLP
#    streams the intermediate dimension; bf16 xn scratch, f32 down-proj acc
# ---------------------------------------------------------------------------
def _mlp_kernel(x_ref, res_ref, wln_ref, wg_ref, wu_ref, wd_ref,
                o_ref, res_out_ref, xn_ref, acc_ref, *, eps):
    it = pl.program_id(1)

    @pl.when(it == 0)
    def _():
        s = x_ref[...].astype(jnp.float32) + res_ref[...].astype(jnp.float32)
        res_out_ref[...] = s.astype(res_out_ref.dtype)
        var = jnp.mean(s * s, axis=-1, keepdims=True)
        xn = s * jax.lax.rsqrt(var + eps) * wln_ref[...].astype(jnp.float32)
        xn_ref[...] = xn.astype(xn_ref.dtype)
        acc_ref[...] = jnp.zeros_like(acc_ref)

    xn = xn_ref[...]                                        # bf16, cached
    gate = jnp.dot(xn, wg_ref[...], preferred_element_type=jnp.float32)
    up = jnp.dot(xn, wu_ref[...], preferred_element_type=jnp.float32)
    h = (jax.nn.silu(gate) * up).astype(wd_ref.dtype)
    acc_ref[...] += jnp.dot(h, wd_ref[...], preferred_element_type=jnp.float32)

    @pl.when(it == pl.num_programs(1) - 1)
    def _():
        o_ref[...] = acc_ref[...].astype(o_ref.dtype)


def fused_addnorm_mlp(x, residual, ln_w, w_gate, w_up, w_down, *, eps=EPS,
                      tm_t=128, ti_t=256):
    T, H = x.shape
    _, I = w_gate.shape
    tm, ti = _pick(T, tm_t), _pick(I, ti_t)
    w_gate = w_gate.astype(jnp.bfloat16)
    w_up = w_up.astype(jnp.bfloat16)
    w_down = w_down.astype(jnp.bfloat16)
    return pl.pallas_call(
        functools.partial(_mlp_kernel, eps=eps),
        out_shape=(jax.ShapeDtypeStruct((T, H), x.dtype),
                   jax.ShapeDtypeStruct((T, H), x.dtype)),
        grid_spec=pltpu.PrefetchScalarGridSpec(
            num_scalar_prefetch=0,
            grid=(T // tm, I // ti),
            in_specs=[
                pl.BlockSpec((tm, H), lambda m, it: (m, 0)),
                pl.BlockSpec((tm, H), lambda m, it: (m, 0)),
                pl.BlockSpec((1, H), lambda m, it: (0, 0)),
                pl.BlockSpec((H, ti), lambda m, it: (0, it)),
                pl.BlockSpec((H, ti), lambda m, it: (0, it)),
                pl.BlockSpec((ti, H), lambda m, it: (it, 0)),
            ],
            out_specs=(pl.BlockSpec((tm, H), lambda m, it: (m, 0)),
                       pl.BlockSpec((tm, H), lambda m, it: (m, 0))),
            scratch_shapes=[pltpu.VMEM((tm, H), jnp.bfloat16),
                            pltpu.VMEM((tm, H), jnp.float32)],
        ),
        compiler_params=pltpu.CompilerParams(
            dimension_semantics=("parallel", "arbitrary"),
            vmem_limit_bytes=48 * 1024 * 1024),
    )(x, residual, ln_w.reshape(1, H), w_gate, w_up, w_down)


# ---------------------------------------------------------------------------
# Full decoder layer (mirrors Qwen3DecoderLayer.forward, single device / seq)
# TODO(synk): RadixAttention KV-cache paging / ForwardBatch batching and the
#             tensor-parallel LayerCommunicator collectives are not modeled;
#             this is a single-device, single-sequence causal prefill.
# ---------------------------------------------------------------------------
def _rope_tables(positions, head_dim, theta):
    inv_freq = 1.0 / (theta ** (jnp.arange(0, head_dim, 2, dtype=jnp.float32)
                                / head_dim))
    freqs = positions.astype(jnp.float32)[:, None] * inv_freq[None, :]
    cos = jnp.cos(freqs)
    sin = jnp.sin(freqs)
    cos_full = jnp.concatenate([cos, cos], axis=-1)       # (T, D)
    sin_signed = jnp.concatenate([-sin, sin], axis=-1)    # (T, D), sign folded
    return cos_full, sin_signed


def qwen3_decoder_layer(positions, hidden_states, residual, params, cfg):
    T, H = hidden_states.shape
    NH = cfg["num_attention_heads"]
    NKV = cfg["num_key_value_heads"]
    D = cfg["head_dim"]
    eps = cfg.get("rms_norm_eps", EPS)
    scale = D ** -0.5
    assert NH % NKV == 0

    cos_full, sin_signed = _rope_tables(positions, D, cfg["rope_theta"])

    # --- prepare_attn: (residual add +) input_layernorm fused into QKV proj ---
    if residual is None:
        (qkv,) = fused_norm_qkv(hidden_states, None, params["input_ln"],
                                params["w_qkv"], eps=eps)
        residual = hidden_states
    else:
        qkv, residual = fused_norm_qkv(hidden_states, residual,
                                       params["input_ln"], params["w_qkv"],
                                       eps=eps)

    # --- q/k per-head RMSNorm + RoPE; q/k slabs read straight from qkv,
    #     softmax scale folded into the q_norm weight (rope/rmsnorm are linear)
    q, k = qk_norm_rope(qkv, params["q_norm"] * scale, params["k_norm"],
                        cos_full, sin_signed,
                        num_heads=NH, num_kv_heads=NKV, head_dim=D, eps=eps)

    # --- flash causal GQA attention (V slab read straight from qkv) ---
    attn = flash_causal_attention(q, k, qkv, NH, NKV, D)          # (T, NH*D) bf16

    # --- o_proj ---
    o = matmul(attn, params["w_o"], out_dtype=hidden_states.dtype)  # (T, H)

    # --- prepare_mlp + mlp: fused add + post_attention_layernorm + MLP ---
    hs, residual = fused_addnorm_mlp(o, residual, params["post_ln"],
                                     params["w_gate"], params["w_up"],
                                     params["w_down"], eps=eps)
    # postprocess_layer: identity on a single device.
    return hs, residual


# ---------------------------------------------------------------------------
# Pure-JAX reference (same math at f32 precision, for the self-check only)
# ---------------------------------------------------------------------------
def reference_layer(positions, hidden_states, residual, params, cfg):
    with jax.default_matmul_precision("highest"):
        T, H = hidden_states.shape
        NH = cfg["num_attention_heads"]
        NKV = cfg["num_key_value_heads"]
        D = cfg["head_dim"]
        eps = cfg.get("rms_norm_eps", EPS)
        rep = NH // NKV
        q_size, kv_size = NH * D, NKV * D
        scale = D ** -0.5

        def rms(x, w):
            xf = x.astype(jnp.float32)
            var = jnp.mean(xf * xf, axis=-1, keepdims=True)
            return xf * jax.lax.rsqrt(var + eps) * w.astype(jnp.float32)

        cos_full, sin_signed = _rope_tables(positions, D, cfg["rope_theta"])
        cos_full = cos_full[:, None, :]
        sin_signed = sin_signed[:, None, :]

        w_qkv = params["w_qkv"].astype(jnp.float32)
        w_o = params["w_o"].astype(jnp.float32)
        w_gate = params["w_gate"].astype(jnp.float32)
        w_up = params["w_up"].astype(jnp.float32)
        w_down = params["w_down"].astype(jnp.float32)

        if residual is None:
            new_res = hidden_states
            hs = rms(hidden_states, params["input_ln"])
        else:
            s = hidden_states.astype(jnp.float32) + residual.astype(jnp.float32)
            new_res = s.astype(hidden_states.dtype)
            hs = rms(s, params["input_ln"])

        qkv = hs @ w_qkv
        q = qkv[:, :q_size].reshape(T, NH, D)
        k = qkv[:, q_size:q_size + kv_size].reshape(T, NKV, D)
        v = qkv[:, q_size + kv_size:].reshape(T, NKV, D)

        def rope(x):
            d2 = D // 2
            xr = jnp.concatenate([x[..., d2:], x[..., :d2]], axis=-1)
            return x * cos_full + xr * sin_signed

        q = rope(rms(q, params["q_norm"]))
        k = rope(rms(k, params["k_norm"]))

        kr = jnp.repeat(k, rep, axis=1)
        vr = jnp.repeat(v, rep, axis=1)
        s = jnp.einsum("qhd,khd->hqk", q, kr) * scale
        row = jnp.arange(T)[:, None]
        col = jnp.arange(T)[None, :]
        s = jnp.where(col <= row, s, -1e30)
        p = jax.nn.softmax(s, axis=-1)
        o = jnp.einsum("hqk,khd->qhd", p, vr).reshape(T, NH * D)

        o = o @ w_o
        s2 = o.astype(jnp.float32) + new_res.astype(jnp.float32)
        new_res2 = s2.astype(hidden_states.dtype)
        hs2 = rms(s2, params["post_ln"])
        gate = hs2 @ w_gate
        up = hs2 @ w_up
        out = (jax.nn.silu(gate) * up) @ w_down
        return out.astype(hidden_states.dtype), new_res2


# ---------------------------------------------------------------------------
# Deterministic parameter init + test drive
# ---------------------------------------------------------------------------
def make_params(key, cfg):
    H = cfg["hidden_size"]
    NH = cfg["num_attention_heads"]
    NKV = cfg["num_key_value_heads"]
    D = cfg["head_dim"]
    I = cfg["intermediate_size"]
    ks = jax.random.split(key, 9)
    s = 0.02

    def ln(k, n):
        return 1.0 + 0.1 * jax.random.normal(k, (n,), jnp.float32)

    def w(k, shape):
        return (s * jax.random.normal(k, shape, jnp.float32)).astype(jnp.bfloat16)

    return {
        "input_ln": ln(ks[0], H),
        "post_ln": ln(ks[1], H),
        "q_norm": ln(ks[2], D),
        "k_norm": ln(ks[3], D),
        "w_qkv": w(ks[4], (H, (NH + 2 * NKV) * D)),
        "w_o": w(ks[5], (NH * D, H)),
        "w_gate": w(ks[6], (H, I)),
        "w_up": w(ks[7], (H, I)),
        "w_down": w(ks[8], (I, H)),
    }


if __name__ == "__main__":
    cfg = dict(
        hidden_size=256,
        num_attention_heads=4,
        num_key_value_heads=2,
        head_dim=128,
        intermediate_size=512,
        rope_theta=1000000.0,
        rms_norm_eps=1e-6,
    )
    T = 256  # tokens of a single prefill sequence

    key = jax.random.PRNGKey(0)
    pkey, xkey = jax.random.split(key)
    params = make_params(pkey, cfg)

    hidden = jax.random.normal(xkey, (T, cfg["hidden_size"]), jnp.float32)
    positions = jnp.arange(T, dtype=jnp.int32)

    # layer call 1: first layer of the stack (residual is None)
    out1, res1 = qwen3_decoder_layer(positions, hidden, None, params, cfg)
    # layer call 2: later layer (fused residual-add path exercised)
    out2, res2 = qwen3_decoder_layer(positions, out1, res1, params, cfg)
    jax.block_until_ready((out1, res1, out2, res2))

    # self-check against a pure-JAX f32 reference (loose tolerance: kernels run
    # the native bf16-operand / f32-accumulate MXU path).
    r_out1, r_res1 = reference_layer(positions, hidden, None, params, cfg)
    r_out2, r_res2 = reference_layer(positions, out1, res1, params, cfg)
    for name, a, b in (("out1", out1, r_out1), ("res1", res1, r_res1),
                       ("out2", out2, r_out2), ("res2", res2, r_res2)):
        err = float(jnp.max(jnp.abs(a.astype(jnp.float32) -
                                    b.astype(jnp.float32))))
        assert jnp.allclose(a.astype(jnp.float32), b.astype(jnp.float32),
                            rtol=3e-2, atol=3e-2), (name, err)

    assert out2.shape == (T, cfg["hidden_size"])
    assert res2.shape == (T, cfg["hidden_size"])
    print("KERNEL_OK")
</pallas_src>

<mosaic_0001>
module attributes {stable_mosaic.version = 11 : i64} {
  func.func @_norm_qkv_kernel(%arg0: i32, %arg1: i32, %arg2: memref<128x256xf32, #tpu.memory_space<vmem>>, %arg3: memref<1x256xf32, #tpu.memory_space<vmem>>, %arg4: memref<256x256xbf16, #tpu.memory_space<vmem>>, %arg5: memref<128x256xf32, #tpu.memory_space<vmem>>, %arg6: memref<128x256xbf16, #tpu.memory_space<vmem>>) attributes {dimension_semantics = [#tpu.dimension_semantics<parallel>, #tpu.dimension_semantics<arbitrary>], iteration_bounds = array<i64: 2, 4>, scalar_prefetch = 0 : i64, scratch_operands = 1 : i64, tpu.core_type = #tpu.core_type<tc>, window_params = [{transform_indices = @transform_0, window_bounds = array<i64: 128, 256>}, {pipeline_mode = #tpu.pipeline_mode<synchronous>, transform_indices = @transform_1, window_bounds = array<i64: 1, 256>}, {transform_indices = @transform_2, window_bounds = array<i64: 256, 256>}, {transform_indices = @transform_3, window_bounds = array<i64: 128, 256>}]} {
    %c0_i32 = arith.constant 0 : i32
    %0 = arith.cmpi eq, %arg1, %c0_i32 : i32
    %1 = arith.extui %0 : i1 to i32
    %c0_i32_0 = arith.constant 0 : i32
    %2 = arith.cmpi ne, %1, %c0_i32_0 : i32
    scf.if %2 {
      %c0_6 = arith.constant 0 : index
      %c0_7 = arith.constant 0 : index
      %7 = vector.load %arg2[%c0_6, %c0_7] : memref<128x256xf32, #tpu.memory_space<vmem>>, vector<128x256xf32>
      %8 = arith.mulf %7, %7 : vector<128x256xf32>
      %cst_8 = arith.constant dense<0.000000e+00> : vector<128xf32>
      %9 = vector.multi_reduction <add>, %8, %cst_8 [1] : vector<128x256xf32> to vector<128xf32>
      %10 = vector.shape_cast %9 : vector<128xf32> to vector<128x1xf32>
      %cst_9 = arith.constant 2.560000e+02 : f32
      %11 = vector.broadcast %cst_9 : f32 to vector<128x1xf32>
      %12 = arith.divf %10, %11 : vector<128x1xf32>
      %cst_10 = arith.constant 9.99999997E-7 : f32
      %13 = vector.broadcast %cst_10 : f32 to vector<128x1xf32>
      %14 = arith.addf %12, %13 : vector<128x1xf32>
      %15 = math.rsqrt %14 : vector<128x1xf32>
      %16 = vector.broadcast %15 : vector<128x1xf32> to vector<128x256xf32>
      %17 = arith.mulf %7, %16 : vector<128x256xf32>
      %c0_11 = arith.constant 0 : index
      %c0_12 = arith.constant 0 : index
      %18 = vector.load %arg3[%c0_11, %c0_12] : memref<1x256xf32, #tpu.memory_space<vmem>>, vector<1x256xf32>
      %19 = vector.broadcast %18 : vector<1x256xf32> to vector<128x256xf32>
      %20 = arith.mulf %17, %19 : vector<128x256xf32>
      %21 = arith.truncf %20 : vector<128x256xf32> to vector<128x256xbf16>
      %c0_13 = arith.constant 0 : index
      %c0_14 = arith.constant 0 : index
      %22 = vector.load %arg6[%c0_13, %c0_14] : memref<128x256xbf16, #tpu.memory_space<vmem>>, vector<128x256xbf16>
      tpu.vector_store %arg6[%c0_13, %c0_14], %21 {strides = array<i32>} : memref<128x256xbf16, #tpu.memory_space<vmem>>, vector<128x256xbf16>,
    } else {
    }
    %c0 = arith.constant 0 : index
    %c0_1 = arith.constant 0 : index
    %3 = vector.load %arg6[%c0, %c0_1] : memref<128x256xbf16, #tpu.memory_space<vmem>>, vector<128x256xbf16>
    %c0_2 = arith.constant 0 : index
    %c0_3 = arith.constant 0 : index
    %4 = vector.load %arg4[%c0_2, %c0_3] : memref<256x256xbf16, #tpu.memory_space<vmem>>, vector<256x256xbf16>
    %cst = arith.constant dense<0.000000e+00> : vector<128x256xf32>
    %5 = tpu.matmul %3, %4, %cst {dimension_numbers = #tpu.dot_dimension_numbers<[1], [0], [0], [1], [0, 0, 1, 1], [], []>} : vector<128x256xbf16>, vector<256x256xbf16>, vector<128x256xf32> -> vector<128x256xf32>
    %c0_4 = arith.constant 0 : index
    %c0_5 = arith.constant 0 : index
    %6 = vector.load %arg5[%c0_4, %c0_5] : memref<128x256xf32, #tpu.memory_space<vmem>>, vector<128x256xf32>
    tpu.vector_store %arg5[%c0_4, %c0_5], %5 {strides = array<i32>} : memref<128x256xf32, #tpu.memory_space<vmem>>, vector<128x256xf32>,
    return
  }
  func.func @transform_0(%arg0: i32, %arg1: i32) -> (i32, i32) {
    %c0_i32 = arith.constant 0 : i32
    %c0_i32_0 = arith.constant 0 : i32
    return %arg0, %c0_i32 : i32, i32
  }
  func.func @transform_1(%arg0: i32, %arg1: i32) -> (i32, i32) {
    %c0_i32 = arith.constant 0 : i32
    %c0_i32_0 = arith.constant 0 : i32
    %c0_i32_1 = arith.constant 0 : i32
    return %c0_i32, %c0_i32_0 : i32, i32
  }
  func.func @transform_2(%arg0: i32, %arg1: i32) -> (i32, i32) {
    %c0_i32 = arith.constant 0 : i32
    %c0_i32_0 = arith.constant 0 : i32
    return %c0_i32, %arg1 : i32, i32
  }
  func.func @transform_3(%arg0: i32, %arg1: i32) -> (i32, i32) {
    %c0_i32 = arith.constant 0 : i32
    return %arg0, %arg1 : i32, i32
  }
}

</mosaic_0001>

<bundles_post_ra>
// kernel: tpu_custom_call.1
= control target key start
LH: loop header
LB: loop body
LE: loop exit
PB: predicated region body
PF: predicated region fallthrough
CT: control target
= control target key end

     0   :  { %s2466_s0 = inlined_call_operand.hbm [shape: f32[256,256], index: 0, kind: input, shape index: {}]   ;;  %s2467_s1 = inlined_call_operand.hbm [shape: f32[1,256], index: 1, kind: input, shape index: {}]   ;;  %s2468_s2 = inlined_call_operand.hbm [shape: bf16[256,1024], index: 2, kind: input, shape index: {}]   ;;  %s2469_s3 = inlined_call_operand.hbm [shape: f32[256,1024], index: 3, kind: output, shape index: {}]  }
   0x1   :  { %2479 = sst [smem:[#allocation20_spill]] %s2466_s0 }
   0x2   :  { %2480 = sst [smem:[#allocation21_spill]] %s2467_s1 }
   0x3   :  { %2481 = sst [smem:[#allocation22_spill]] %s2469_s3 }
   0x4   :  { %8 = vsyncpa [#allocation4], 0 }
   0x5   :  { %10 = vsyncpa [#allocation4 + $0x1], 0 }
   0x6   :  { %11 = vsyncpa [#allocation7], 0 }
   0x7   :  { %12 = vsyncpa [#allocation5], 0 }
   0x8   :  { %14 = vsyncpa [#allocation5 + $0x1], 0  ;;  %s1832_s12 = smov 0   ;;  %s1834_s13 = smov 0  }
   0x9   :  { %s1836_s14 = smov 0   ;;  %s1838_s15 = smov 0  }
   0xa   :  { %s1840_s16 = smov 0   ;;  %s1842_s17 = smov 0  }
   0xb   :  { %s1844_s18 = smov 0   ;;  %s1846_s19 = smov 0  }
   0xc   :  { %s1848_s20 = smov 0   ;;  %s1850_s21 = smov 0  }
   0xd   :  { %s1852_s22 = smov 0   ;;  %s1854_s23 = smov 0  }
   0xe   :  { %s1856_s24 = smov 0   ;;  %s1858_s25 = smov 0  }
   0xf LB: > { %2482 = sst [smem:[#allocation14_spill]] %s1782_s21  ;;  %s29_s26 = sadd.s32 1, %s1790_s23  ;;  %s1798_s25 = sphi %s1858_s25, %s20_s25   ;;  %s1794_s24 = sphi %s1856_s24, %s2528_s24   ;;  %s1790_s23 = sphi %s1854_s23, %s2527_s23   ;;  %s1786_s22 = sphi %s1852_s22, %s2514_s22   ;;  %s1782_s21 = sphi %s1850_s21, %s2526_s21   ;;  %s1778_s20 = sphi %s1848_s20, %s2525_s20   ;;  %s1774_s19 = sphi %s1846_s19, %s2524_s19   ;;  %s1770_s18 = sphi %s1844_s18, %s2523_s18   ;;  %s1766_s17 = sphi %s1842_s17, %s2522_s17   ;;  %s1762_s16 = sphi %s1840_s16, %s2521_s16   ;;  %s1758_s15 = sphi %s1838_s15, %s2520_s15   ;;  %s1754_s14 = sphi %s1836_s14, %s2519_s14   ;;  %s1750_s13 = sphi %s1834_s13, %s2518_s13   ;;  %s1746_s12 = sphi %s1832_s12, %s2517_s12  }
  0x10   : > { %2483 = sst [smem:[#allocation15_spill]] %s1786_s22  ;;  %s32_s27 = sadd.s32 1, %s1794_s24 }
  0x11   : > { %2484 = sst [smem:[#allocation16_spill]] %s1794_s24  ;;  %p30_p0 = scmp.ge.s32.totalorder %s29_s26, 4 }
  0x12   : > { %s39_s28 = sadd.s32 1, %s1778_s20  ;;  %p46_p1 = scmp.ne.s32.totalorder %s1778_s20, %s1774_s19 }
  0x13   : > { %p47_p2 = scmp.eq.s32.totalorder %s1798_s25, 0  ;;  %s2530_s26 = smov (%p30_p0, %s29_s26), 0 }
  0x14   : > { %2485 = sst [smem:[#allocation17_spill]] %s2530_s26  ;;  %s2532_s27 = smov (!%p30_p0, %s32_s27), %s1794_s24 }
  0x15   : > { %p1913_p3 = por %p47_p2, %p46_p1  ;;  %s1919_s30 = ssub.s32 %s1790_s23, %s2530_s26 }
  0x16   : > { %p34_p4 = scmp.ge.s32.totalorder %s2532_s27, 2  ;;  %p84_p5 = scmp.eq.s32.totalorder %s1919_s30, 0 }
  0x17   : > { %p2473_p6 = scmp.lt.s32.totalorder %s1798_s25, 8  ;;  %s162_s4 = sand.u32 1, %s1798_s25  }
  0x18   : > { %s2534_s27 = smov (%p34_p4, %s2532_s27), 0  ;;  %s164_s5 = sand.u32 1, %s1778_s20  }
  0x19   : > { %2487 = sst [smem:[#allocation18_spill]] %s2534_s27  ;;  %s36_s6 = ssub.s32 %s1794_s24, %s2534_s27 }
  0x1a   : > { %p37_p7 = scmp.eq.s32.totalorder %s36_s6, 0  ;;  %s111_s7 = sor.u32 %s1919_s30, %s36_s6 }
  0x1b   : > { %p1930_p8 = scmp.eq.s32.totalorder %s111_s7, 0  ;;  %s1183_s9 = sshll.u32 %s164_s5, 8 }
  0x1c   : > { %s1935_s10 = scalar_select %p37_p7, %s1778_s20, %s39_s28  }
  0x1d   : > { %s1268_s11 = sshll.u32 %s1794_s24, 12  ;;  %s2490_s0 = sld [smem:[#allocation20_spill]] }
  0x1e   : > { %2489 = sst [smem:[#allocation19_spill]] %s1935_s10  ;;  %s166_s21 = scalar_lea.vmem [#allocation3], %s1183_s9 }
  0x1f   : > { %s174_s1 = sshll.u32 %s166_s21, 4  ;;  %p1945_p9 = pnand %p2473_p6, %p1913_p3  ;;  %s175_s1 = int_to_ptr.vmem [resolvable:$true] %s174_s1 }
  0x20   : > { %s1949_s6 = scalar_lea.sflag [#allocation4], %s162_s4  ;;  %s1577_s28 = scalar_lea.vmem %s175_s1, 4096 }
  0x21   : > { %p1566_p10 = pneg %p1945_p9  ;;  %p1578_p11 = scmp.ne.s32.totalorder %s175_s1, %s1577_s28 }
  0x22   : > { %s1800_s3 = smov [#allocation3]  }
  0x23   : > { %s173_s22 = scalar_lea.hbm %s2490_s0, %s1268_s11  ;;  %p1580_p12 = pnand %p1578_p11, %p1566_p10 }
  0x24   : > { %s1582_s26 = sshll.u32 %s1800_s3, 4  ;;  %s1583_s26 = int_to_ptr.vmem [resolvable:$false] %s1582_s26 }
  0x25   : > { %p1581_p13 = pneg %p1580_p12  ;;  %s1584_s21 = scalar_lea.vmem %s1583_s26, 8192 }
  0x26   : > { %p1585_p0 = scmp.lt.s32.totalorder %s175_s1, %s1583_s26  ;;  %p1586_p1 = scmp.lt.s32.totalorder %s1584_s21, %s1577_s28 }
  0x28   : > { %p1587_p4 = por %p1586_p1, %p1585_p0 }
  0x2a   : > { %p1588_p3 = pnand %p1587_p4, %p1581_p13 }
  0x2c   : > { %1591 = shalt.err (!%p1588_p3)
}
  0x2d   : > { %s1801_s29 = smov 256   ;;  %s1802_s4 = smov 16  }
  0x2e   : > { %1336 = dma.hbm_to_vmem [thread:$0]  (!%p1945_p9), %s173_s22, 4096, %s175_s1, %s1949_s6, %s1801_s29, %s1801_s29, %s1802_s4  }
  0x2f   : > { %s1957_s5 = sadd.s32 4294967295, %s1798_s25   ;;  %s1179_s7 = sadd.s32 4294967294, %s1798_s25  }
  0x30   : > { %p52_p7 = scmp.ne.s32.totalorder %s1774_s19, %s1770_s18  ;;  %p2475_p10 = scmp.eq.s32.totalorder %s1957_s5, 0 }
  0x31   : > { %s86_s9 = sadd.s32 1, %s1766_s17  ;;  %p93_p9 = scmp.ne.s32.totalorder %s1766_s17, %s1762_s16 }
  0x32   : > { %s1967_s11 = scalar_select %p84_p5, %s1766_s17, %s86_s9  }
  0x33   : > { %p1971_p11 = por %p2475_p10, %p52_p7  ;;  %p99_p12 = scmp.ne.s32.totalorder %s1762_s16, %s1758_s15 }
  0x34   : > { %s114_s22 = sadd.s32 1, %s1754_s14  ;;  %p1982_p13 = por %p93_p9, %p47_p2 }
  0x35   : > { %s2492_s1 = scalar_select %p1971_p11, 1, 0 }
  0x36   : > { %p124_p0 = scmp.ne.s32.totalorder %s1754_s14, %s1750_s13  ;;  %p1990_p5 = por %p99_p12, %p2475_p10 }
  0x37   : > { %p125_p1 = scmp.eq.s32.totalorder %s1957_s5, 7  ;;  %p130_p2 = scmp.ne.s32.totalorder %s1750_s13, %s1746_s12 }
  0x38   : > { %s2494_s18 = scalar_select %p1990_p5, 1, 0 }
  0x39   : > { %s1998_s30 = scalar_select %p1930_p8, %s1754_s14, %s114_s22  }
  0x3a   : > { %p2000_p4 = por %p125_p1, %p124_p0  ;;  %p131_p3 = scmp.eq.s32.totalorder %s1179_s7, 7 }
  0x3b   : > { %p1180_p7 = scmp.ge.s32.totalorder %s1798_s25, 1  ;;  %p138_p9 = scmp.lt.s32.totalorder %s1798_s25, 9 }
  0x3c   : > { %s2495_s15 = scalar_select %p2000_p4, 1, 0 }
  0x3d   : > { %p2008_p6 = por %p131_p3, %p130_p2  ;;  %p2012_p12 = pnand %p1180_p7, %p138_p9 }
  0x3e   : > { %s1803_s8 = smov [#allocation6]   ;;  %p2498_p8 = scmp.lt.s32.totalorder %s1798_s25, 8 }
  0x3f   : > { %s2496_s28 = scalar_select %p2008_p6, 1, 0 }
  0x40   : > { %s151_s26 = sshll.u32 %s1803_s8, 4  ;;  %p2020_p0 = pnand %p2498_p8, %p1982_p13  ;;  %s152_s26 = int_to_ptr.vmem [resolvable:$true] %s151_s26 }
  0x41   : > { %p1329_p1 = pneg %p2012_p12  ;;  %s186_s29 = sand.u32 1, %s1766_s17  }
  0x42   : > { %s1187_s4 = sshll.u32 %s186_s29, 8  ;;  %s1269_s9 = sshll.u32 %s1790_s23, 7 }
  0x43   : > { %p2029_p2 = pnand %p1329_p1, %p2475_p10  ;;  %s188_s22 = scalar_lea.vmem [#allocation8], %s1187_s4 }
  0x44   : > { %s195_s8 = sshll.u32 %s188_s22, 4  ;;  %s2037_s24 = scalar_lea.hbm %s2468_s2, %s1269_s9  ;;  %s196_s8 = int_to_ptr.vmem [resolvable:$true] %s195_s8 }
  0x45   : > { %p1594_p13 = pneg %p2029_p2  ;;  %s1603_s10 = scalar_lea.vmem %s152_s26, 32 }
  0x46   : > { %p1604_p3 = scmp.ne.s32.totalorder %s152_s26, %s1603_s10  ;;  %p1611_p8 = scmp.lt.s32.totalorder %s152_s26, %s152_s26 }
  0x47   : > { %p1612_p1 = scmp.lt.s32.totalorder %s1603_s10, %s1603_s10 }
  0x48   : > { %p1606_p7 = pnand %p1604_p3, %p1594_p13 }
  0x49   : > { %p1613_p10 = por %p1612_p1, %p1611_p8 }
  0x4a   : > { %p1607_p9 = pneg %p1606_p7 }
  0x4c   : > { %p1614_p6 = pnand %p1613_p10, %p1607_p9 }
  0x4e   : > { %1617 = shalt.err (!%p1614_p6)
}
  0x4f   : > { %s2501_s22 = sld [smem:[#allocation21_spill]]  ;;  %p1620_p4 = pneg %p2020_p0 }
  0x50   : > { %s1631_s0 = scalar_lea.vmem %s196_s8, 4096  ;;  %s1804_s9 = smov [#allocation8]  }
  0x51   : > { %p1632_p5 = scmp.ne.s32.totalorder %s196_s8, %s1631_s0  ;;  %s1636_s27 = sshll.u32 %s1804_s9, 4  ;;  %s1637_s27 = int_to_ptr.vmem [resolvable:$false] %s1636_s27 }
  0x52   : > { %s1638_s10 = scalar_lea.vmem %s1637_s27, 8192  ;;  %p1639_p10 = scmp.lt.s32.totalorder %s196_s8, %s1637_s27 }
  0x53   : > { %p1634_p11 = pnand %p1632_p5, %p1620_p4  ;;  %p1640_p6 = scmp.lt.s32.totalorder %s1638_s10, %s1631_s0 }
  0x55   : > { %1332 = dma.hbm_to_vmem [thread:$0]  (!%p2029_p2), %s2501_s22, 32, %s152_s26, [#allocation7]  }
  0x56   : > { %p1635_p13 = pneg %p1634_p11  ;;  %p1641_p3 = por %p1640_p6, %p1639_p10 }
  0x58   : > { %p1642_p7 = pnand %p1641_p3, %p1635_p13 }
  0x5a   : > { %1645 = shalt.err (!%p1642_p7)
}
  0x5b   : > { %s1805_s7 = smov 512   ;;  %s1806_s26 = smov 128  }
  0x5c   : > { %s1807_s29 = smov 8   ;;  %207 = sbr.rel (%p2012_p12) target bundleno = 619 (0x26b), region = 32 }
  0x5d   : > { %1339 = dma.hbm_to_vmem [thread:$0]  (!%p2020_p0), %s2037_s24, 4096, %s196_s8, %s1949_s6, %s1805_s7, %s1806_s26, %s1807_s29  }
  0x5e   : > { %s209_s4 = sand.u32 (!%p2012_p12), 1, %s1957_s5   ;;  %s211_s22 = sand.u32 (!%p2012_p12), 1, %s1774_s19  }
  0x5f   : > { %s1191_s0 = sshll.u32 (!%p2012_p12), %s211_s22, 8  ;;  %s210_s9 = scalar_lea.sflag (!%p2012_p12), [#allocation4], %s209_s4 }
  0x60   : > { %s2056_s27 = scalar_lea.vmem (!%p2012_p12), [#allocation3], %s1191_s0  ;;  %p2502_p11 = scmp.ne.s32.totalorder (!%p2012_p12), %s2492_s1, 0 }
  0x62   : > { %1729 = dma.done.wait (%p2502_p11), %s210_s9, 4096  }
  0x63   : > { %1731 = vsyncadd (%p2502_p11), %s210_s9, 4294963200  ;;  %p2503_p5 = scmp.eq.s32.totalorder %s1957_s5, 0 }
  0x65   : > { %1733 = dma.done.wait (%p2503_p5), [#allocation7], 32   ;;  %p2504_p4 = pmov %p2503_p5 }
  0x66   : > { %s224_s24 = sand.u32 1, %s1762_s16   ;;  %p2505_p12 = scmp.ne.s32.totalorder %s2494_s18, 0 }
  0x67   : > { %1735 = vsyncadd (%p2504_p4), [#allocation7], 4294967264  ;;  %s1193_s6 = sshll.u32 %s224_s24, 8 }
  0x68   : > { %s2067_s3 = scalar_lea.vmem [#allocation8], %s1193_s6 }
  0x69   : > { %1737 = dma.done.wait (%p2505_p12), %s210_s9, 4096  }
  0x6a   : > { %1739 = vsyncadd (%p2505_p12), %s210_s9, 4294963200  ;;  %s251_s1 = sand.u32 1, %s1750_s13   ;;  %s2506_s5 = sld [smem:[#allocation14_spill]] }
  0x6b   : > { %s1194_s21 = sshll.u32 %s251_s1, 8 }
  0x6c   : > { %s2076_s8 = scalar_lea.vmem [#allocation9], %s1194_s21 }
  0x70   : > { %p1195_p0 = scmp.ne.s32.totalorder %s2506_s5, 0 }
  0x72   : > { %261 = sbr.rel (%p1195_p0) target bundleno = 316 (0x13c), region = 48 }
  0x77   : > { %v2080_v0 = vld [vmem:[%s2056_s27 + $0x20] sm:$0xff]  ;;  %v2083_v1 = vld [vmem:[%s2056_s27 + $0x28] sm:$0xff]  ;;  %v2098_v7 = vld [vmem:[%s2056_s27 + $0x30] sm:$0xff] }
  0x78   : > { %v2086_v2 = vld [vmem:[%s2056_s27] sm:$0xff]  ;;  %v298_v3 = vmul.f32 %v2080_v0, %v2080_v0  ;;  %v299_v4 = vmul.f32 %v2083_v1, %v2083_v1  ;;  %v2093_v5 = vld [vmem:[%s2056_s27 + $0x8] sm:$0xff]  ;;  %v2101_v8 = vld [vmem:[%s2056_s27 + $0x38] sm:$0xff]  ;;  %v300_v10 = vmul.f32 %v2098_v7, %v2098_v7 }
  0x79   : > { %v294_v6 = vmul.f32 %v2086_v2, %v2086_v2  ;;  %v295_v9 = vmul.f32 %v2093_v5, %v2093_v5  ;;  %v301_v11 = vmul.f32 %v2101_v8, %v2101_v8  ;;  %v2110_v12 = vld [vmem:[%s2056_s27 + $0x10] sm:$0xff]  ;;  %v2113_v13 = vld [vmem:[%s2056_s27 + $0x18] sm:$0xff]  ;;  %v2126_v19 = vld [vmem:[%s2056_s27 + $0x40] sm:$0xff] }
  0x7a   : > { %v2116_v14 = vld [vmem:[%s2056_s27 + $0x50] sm:$0xff]  ;;  %v332_v15 = vadd.f32 %v299_v4, %v298_v3  ;;  %v296_v16 = vmul.f32 %v2110_v12, %v2110_v12  ;;  %v297_v17 = vmul.f32 %v2113_v13, %v2113_v13  ;;  %v2123_v18 = vld [vmem:[%s2056_s27 + $0x58] sm:$0xff]  ;;  %v2129_v20 = vld [vmem:[%s2056_s27 + $0x48] sm:$0xff]  ;;  %v302_v26 = vmul.f32 %v2126_v19, %v2126_v19 }
  0x7b   : > { %v326_v21 = vadd.f32 %v295_v9, %v294_v6  ;;  %v335_v22 = vadd.f32 %v301_v11, %v300_v10  ;;  %v304_v23 = vmul.f32 %v2116_v14, %v2116_v14  ;;  %v305_v24 = vmul.f32 %v2123_v18, %v2123_v18  ;;  %v2140_v28 = vld [vmem:[%s2056_s27 + $0x70] sm:$0xff]  ;;  %v2143_v29 = vld [vmem:[%s2056_s27 + $0x78] sm:$0xff]  ;;  %v2146_v30 = vld [vmem:[%s2056_s27 + $0x60] sm:$0xff] }
  0x7c   : > { %333 = vadd.xlane.f32.xlu1 %v332_v15  ;;  %v329_v25 = vadd.f32 %v297_v17, %v296_v16  ;;  %v303_v27 = vmul.f32 %v2129_v20, %v2129_v20  ;;  %v2149_v31 = vld [vmem:[%s2056_s27 + $0x68] sm:$0xff]  ;;  %v308_v33 = vmul.f32 %v2140_v28, %v2140_v28  ;;  %v309_v34 = vmul.f32 %v2143_v29, %v2143_v29  ;;  %v2160_v38 = vld [vmem:[%s2056_s27 + $0x90] sm:$0xff]  ;;  %v2163_v39 = vld [vmem:[%s2056_s27 + $0x98] sm:$0xff] }
  0x7d   : > { %327 = vadd.xlane.f32.xlu0 %v326_v21  ;;  %v341_v32 = vadd.f32 %v305_v24, %v304_v23  ;;  %v306_v36 = vmul.f32 %v2146_v30, %v2146_v30  ;;  %v307_v37 = vmul.f32 %v2149_v31, %v2149_v31  ;;  %v2166_v40 = vld [vmem:[%s2056_s27 + $0x80] sm:$0xff]  ;;  %v2169_v41 = vld [vmem:[%s2056_s27 + $0x88] sm:$0xff]  ;;  %v312_v43 = vmul.f32 %v2160_v38, %v2160_v38  ;;  %v2180_v48 = vld [vmem:[%s2056_s27 + $0xb0] sm:$0xff] }
  0x7e   : > { %v338_v35 = vadd.f32 %v303_v27, %v302_v26  ;;  %v347_v42 = vadd.f32 %v309_v34, %v308_v33  ;;  %v313_v44 = vmul.f32 %v2163_v39, %v2163_v39  ;;  %v310_v46 = vmul.f32 %v2166_v40, %v2166_v40  ;;  %v2183_v49 = vld [vmem:[%s2056_s27 + $0xb8] sm:$0xff]  ;;  %v2186_v50 = vld [vmem:[%s2056_s27 + $0xa0] sm:$0xff]  ;;  %v2189_v51 = vld [vmem:[%s2056_s27 + $0xa8] sm:$0xff] }
  0x7f   : > { %v344_v45 = vadd.f32 %v307_v37, %v306_v36  ;;  %v311_v47 = vmul.f32 %v2169_v41, %v2169_v41  ;;  %v316_v53 = vmul.f32 %v2180_v48, %v2180_v48  ;;  %v317_v54 = vmul.f32 %v2183_v49, %v2183_v49  ;;  %v2200_v58 = vld [vmem:[%s2056_s27 + $0xd0] sm:$0xff]  ;;  %v2203_v59 = vld [vmem:[%s2056_s27 + $0xd8] sm:$0xff]  ;;  %v2206_v60 = vld [vmem:[%s2056_s27 + $0xc0] sm:$0xff] }
  0x80   : > { %336 = vadd.xlane.f32.xlu1 %v335_v22  ;;  %v353_v52 = vadd.f32 %v313_v44, %v312_v43  ;;  %v314_v56 = vmul.f32 %v2186_v50, %v2186_v50  ;;  %v315_v57 = vmul.f32 %v2189_v51, %v2189_v51  ;;  %v2209_v61 = vld [vmem:[%s2056_s27 + $0xc8] sm:$0xff]  ;;  %v320_v63 = vmul.f32 %v2200_v58, %v2200_v58  ;;  %v2220_v10 = vld [vmem:[%s2056_s27 + $0xf0] sm:$0xff]  ;;  %v2223_v11 = vld [vmem:[%s2056_s27 + $0xf8] sm:$0xff] }
  0x81   : > { %330 = vadd.xlane.f32.xlu0 %v329_v25  ;;  %v350_v55 = vadd.f32 %v311_v47, %v310_v46  ;;  %v359_v62 = vadd.f32 %v317_v54, %v316_v53  ;;  %v321_v3 = vmul.f32 %v2203_v59, %v2203_v59  ;;  %v318_v6 = vmul.f32 %v2206_v60, %v2206_v60  ;;  %v2226_v15 = vld [vmem:[%s2056_s27 + $0xe0] sm:$0xff]  ;;  %v2229_v16 = vld [vmem:[%s2056_s27 + $0xe8] sm:$0xff] }
  0x82   : > { %v356_v4 = vadd.f32 %v315_v57, %v314_v56  ;;  %v319_v9 = vmul.f32 %v2209_v61, %v2209_v61  ;;  %v324_v21 = vmul.f32 %v2220_v10, %v2220_v10  ;;  %v325_v22 = vmul.f32 %v2223_v11, %v2223_v11 }
  0x83   : > { %v365_v17 = vadd.f32 %v321_v3, %v320_v63  ;;  %v322_v24 = vmul.f32 %v2226_v15, %v2226_v15  ;;  %v323_v25 = vmul.f32 %v2229_v16, %v2229_v16  ;;  %v457_v43 = vlaneseq }
  0x84   : > { %342 = vadd.xlane.f32.xlu1 %v341_v32  ;;  %v362_v23 = vadd.f32 %v319_v9, %v318_v6  ;;  %v371_v26 = vadd.f32 %v325_v22, %v324_v21  ;;  %v455_v21 = vld [vmem:[#allocation6] sm:$0x3] }
  0x85   : > { %339 = vadd.xlane.f32.xlu0 %v338_v35  ;;  %v368_v27 = vadd.f32 %v323_v25, %v322_v24  ;;  %v458_v54 = vshrl.u32 %v457_v43, 7 }
  0x87   : > { %v463_v6 = vsub.s32 1, %v458_v54 }
  0x88   : > { %348 = vadd.xlane.f32.xlu1 %v347_v42 }
  0x89   : > { %345 = vadd.xlane.f32.xlu0 %v344_v45 }
  0x8c   : > { %354 = vadd.xlane.f32.xlu1 %v353_v52 }
  0x8d   : > { %351 = vadd.xlane.f32.xlu0 %v350_v55 }
  0x90   : > { %360 = vadd.xlane.f32.xlu1 %v359_v62 }
  0x91   : > { %357 = vadd.xlane.f32.xlu0 %v356_v4  ;;  %v459_v4 = vsub.s32 0, %v458_v54 }
  0x94   : > { %366 = vadd.xlane.f32.xlu1 %v365_v17 }
  0x95   : > { %363 = vadd.xlane.f32.xlu0 %v362_v23 }
  0x98   : > { %372 = vadd.xlane.f32.xlu1 %v371_v26  ;;  %v2239_v26 = vrot.slane %v455_v21, %v459_v4 }
  0x99   : > { %369 = vadd.xlane.f32.xlu0 %v368_v27  ;;  %v2241_v27 = vrot.slane %v455_v21, %v463_v6 }
 0x105   : > { %v334_v32 = vpop.xlane.xlu1 %333 }
 0x106   : > { %v377_v33 = vmul.f32 0.00390625, %v334_v32  ;;  %v328_v34 = vpop.xlane.xlu0 %327 }
 0x107   : > { %v375_v35 = vmul.f32 0.00390625, %v328_v34 }
 0x108   : > { %v393_v36 = vadd.f32 1e-06, %v377_v33 }
 0x109   : > { %v391_v37 = vadd.f32 1e-06, %v375_v35  ;;  %v337_v42 = vpop.xlane.xlu1 %336 }
 0x10a   : > { %1469 = vrsqrt.f32 %v393_v36  ;;  %v378_v44 = vmul.f32 0.00390625, %v337_v42  ;;  %v331_v45 = vpop.xlane.xlu0 %330 }
 0x10b   : > { %1471 = vrsqrt.f32 %v391_v37  ;;  %v376_v46 = vmul.f32 0.00390625, %v331_v45 }
 0x10c   : > { %v394_v47 = vadd.f32 1e-06, %v378_v44 }
 0x10d   : > { %v392_v52 = vadd.f32 1e-06, %v376_v46  ;;  %v343_v53 = vpop.xlane.xlu1 %342 }
 0x10e   : > { %1473 = vrsqrt.f32 %v394_v47  ;;  %v380_v55 = vmul.f32 0.00390625, %v343_v53  ;;  %v340_v56 = vpop.xlane.xlu0 %339 }
 0x10f   : > { %1475 = vrsqrt.f32 %v392_v52  ;;  %v379_v57 = vmul.f32 0.00390625, %v340_v56 }
 0x110   : > { %v396_v62 = vadd.f32 1e-06, %v380_v55 }
 0x111   : > { %v395_v63 = vadd.f32 1e-06, %v379_v57  ;;  %v349_v3 = vpop.xlane.xlu1 %348 }
 0x112   : > { %1477 = vrsqrt.f32 %v396_v62  ;;  %v382_v9 = vmul.f32 0.00390625, %v349_v3  ;;  %v346_v17 = vpop.xlane.xlu0 %345 }
 0x113   : > { %1479 = vrsqrt.f32 %v395_v63  ;;  %v381_v22 = vmul.f32 0.00390625, %v346_v17 }
 0x114   : > { %v398_v23 = vadd.f32 1e-06, %v382_v9 }
 0x115   : > { %v397_v24 = vadd.f32 1e-06, %v381_v22  ;;  %v355_v25 = vpop.xlane.xlu1 %354 }
 0x116   : > { %1481 = vrsqrt.f32 %v398_v23  ;;  %v384_v32 = vmul.f32 0.00390625, %v355_v25  ;;  %v352_v33 = vpop.xlane.xlu0 %351 }
 0x117   : > { %v1470_v34 = vpop.eup %1469  ;;  %1483 = vrsqrt.f32 %v397_v24  ;;  %v383_v35 = vmul.f32 0.00390625, %v352_v33 }
 0x118   : > { %v1472_v36 = vpop.eup %1471  ;;  %v427_v37 = vmul.f32 %v1470_v34, %v2080_v0  ;;  %v428_v42 = vmul.f32 %v1470_v34, %v2083_v1  ;;  %v400_v43 = vadd.f32 1e-06, %v384_v32 }
 0x119   : > { %v423_v44 = vmul.f32 %v1472_v36, %v2086_v2  ;;  %v424_v45 = vmul.f32 %v1472_v36, %v2093_v5  ;;  %v399_v46 = vadd.f32 1e-06, %v383_v35  ;;  %v361_v47 = vpop.xlane.xlu1 %360 }
 0x11a   : > { %v471_v52 = vmul.f32 %v2239_v26, %v427_v37  ;;  %v472_v53 = vmul.f32 %v2241_v27, %v428_v42  ;;  %1485 = vrsqrt.f32 %v400_v43  ;;  %v386_v54 = vmul.f32 0.00390625, %v361_v47  ;;  %v358_v55 = vpop.xlane.xlu0 %357 }
 0x11b   : > { %v1474_v56 = vpop.eup %1473  ;;  %v467_v57 = vmul.f32 %v2239_v26, %v423_v44  ;;  %v468_v0 = vmul.f32 %v2241_v27, %v424_v45  ;;  %1487 = vrsqrt.f32 %v399_v46  ;;  %v385_v1 = vmul.f32 0.00390625, %v358_v55 }
 0x11c   : > { %v1476_v62 = vpop.eup %1475  ;;  %v1272_v2 = vpack.c.bf16 %v472_v53, %v471_v52  ;;  %v429_v5 = vmul.f32 %v1474_v56, %v2098_v7  ;;  %v430_v63 = vmul.f32 %v1474_v56, %v2101_v8  ;;  %v402_v3 = vadd.f32 1e-06, %v386_v54 }
 0x11d   : > { %v1270_v4 = vpack.c.bf16 %v468_v0, %v467_v57  ;;  %v425_v6 = vmul.f32 %v1476_v62, %v2110_v12  ;;  %v426_v9 = vmul.f32 %v1476_v62, %v2113_v13  ;;  %v401_v17 = vadd.f32 1e-06, %v385_v1  ;;  %v367_v21 = vpop.xlane.xlu1 %366 }
 0x11e   : > { %597 = vst [vmem:[#allocation2 + $0x58] sm:$0xff] %v1272_v2  ;;  %v473_v22 = vmul.f32 %v2239_v26, %v429_v5  ;;  %v474_v23 = vmul.f32 %v2241_v27, %v430_v63  ;;  %1489 = vrsqrt.f32 %v402_v3  ;;  %v388_v24 = vmul.f32 0.00390625, %v367_v21  ;;  %v364_v25 = vpop.xlane.xlu0 %363 }
 0x11f   : > { %v1478_v32 = vpop.eup %1477  ;;  %595 = vst [vmem:[#allocation2 + $0x30] sm:$0xff] %v1270_v4  ;;  %v469_v7 = vmul.f32 %v2239_v26, %v425_v6  ;;  %v470_v8 = vmul.f32 %v2241_v27, %v426_v9  ;;  %1491 = vrsqrt.f32 %v401_v17  ;;  %v387_v12 = vmul.f32 0.00390625, %v364_v25 }
 0x120   : > { %v1480_v33 = vpop.eup %1479  ;;  %v1273_v13 = vpack.c.bf16 %v474_v23, %v473_v22  ;;  %v433_v34 = vmul.f32 %v1478_v32, %v2116_v14  ;;  %v434_v35 = vmul.f32 %v1478_v32, %v2123_v18  ;;  %v404_v36 = vadd.f32 1e-06, %v388_v24 }
 0x121   : > { %v1271_v37 = vpack.c.bf16 %v470_v8, %v469_v7  ;;  %v431_v42 = vmul.f32 %v1480_v33, %v2126_v19  ;;  %v432_v43 = vmul.f32 %v1480_v33, %v2129_v20  ;;  %v403_v44 = vadd.f32 1e-06, %v387_v12  ;;  %v373_v45 = vpop.xlane.xlu1 %372 }
 0x122   : > { %598 = vst [vmem:[#allocation2 + $0x18] sm:$0xff] %v1273_v13  ;;  %v477_v46 = vmul.f32 %v2239_v26, %v433_v34  ;;  %v478_v47 = vmul.f32 %v2241_v27, %v434_v35  ;;  %1493 = vrsqrt.f32 %v404_v36  ;;  %v390_v52 = vmul.f32 0.00390625, %v373_v45  ;;  %v370_v53 = vpop.xlane.xlu0 %369 }
 0x123   : > { %v1482_v54 = vpop.eup %1481  ;;  %596 = vst [vmem:[#allocation2] sm:$0xff] %v1271_v37  ;;  %v475_v14 = vmul.f32 %v2239_v26, %v431_v42  ;;  %v476_v18 = vmul.f32 %v2241_v27, %v432_v43  ;;  %1495 = vrsqrt.f32 %v403_v44  ;;  %v389_v19 = vmul.f32 0.00390625, %v370_v53 }
 0x124   : > { %v1484_v55 = vpop.eup %1483  ;;  %v1275_v20 = vpack.c.bf16 %v478_v47, %v477_v46  ;;  %v437_v56 = vmul.f32 %v1482_v54, %v2140_v28  ;;  %v438_v57 = vmul.f32 %v1482_v54, %v2143_v29  ;;  %v406_v0 = vadd.f32 1e-06, %v390_v52 }
 0x125   : > { %v1274_v1 = vpack.c.bf16 %v476_v18, %v475_v14  ;;  %v435_v62 = vmul.f32 %v1484_v55, %v2146_v30  ;;  %v436_v2 = vmul.f32 %v1484_v55, %v2149_v31  ;;  %v405_v5 = vadd.f32 1e-06, %v389_v19 }
 0x126   : > { %600 = vst [vmem:[#allocation2 + $0x68] sm:$0xff] %v1275_v20  ;;  %v481_v63 = vmul.f32 %v2239_v26, %v437_v56  ;;  %v482_v3 = vmul.f32 %v2241_v27, %v438_v57  ;;  %1497 = vrsqrt.f32 %v406_v0 }
 0x127   : > { %v1486_v4 = vpop.eup %1485  ;;  %599 = vst [vmem:[#allocation2 + $0x50] sm:$0xff] %v1274_v1  ;;  %v479_v6 = vmul.f32 %v2239_v26, %v435_v62  ;;  %v480_v28 = vmul.f32 %v2241_v27, %v436_v2  ;;  %1499 = vrsqrt.f32 %v405_v5 }
 0x128   : > { %v1488_v29 = vpop.eup %1487  ;;  %v1277_v9 = vpack.c.bf16 %v482_v3, %v481_v63  ;;  %v441_v30 = vmul.f32 %v1486_v4, %v2160_v38  ;;  %v442_v31 = vmul.f32 %v1486_v4, %v2163_v39 }
 0x129   : > { %v1276_v17 = vpack.c.bf16 %v480_v28, %v479_v6  ;;  %v439_v21 = vmul.f32 %v1488_v29, %v2166_v40  ;;  %v440_v22 = vmul.f32 %v1488_v29, %v2169_v41 }
 0x12a   : > { %602 = vst [vmem:[#allocation2 + $0x48] sm:$0xff] %v1277_v9  ;;  %v485_v23 = vmul.f32 %v2239_v26, %v441_v30  ;;  %v486_v24 = vmul.f32 %v2241_v27, %v442_v31 }
 0x12b   : > { %v1490_v25 = vpop.eup %1489  ;;  %601 = vst [vmem:[#allocation2 + $0x8] sm:$0xff] %v1276_v17  ;;  %v483_v32 = vmul.f32 %v2239_v26, %v439_v21  ;;  %v484_v7 = vmul.f32 %v2241_v27, %v440_v22 }
 0x12c   : > { %v1492_v8 = vpop.eup %1491  ;;  %v1279_v38 = vpack.c.bf16 %v486_v24, %v485_v23  ;;  %v445_v39 = vmul.f32 %v1490_v25, %v2180_v48  ;;  %v446_v12 = vmul.f32 %v1490_v25, %v2183_v49 }
 0x12d   : > { %v1278_v40 = vpack.c.bf16 %v484_v7, %v483_v32  ;;  %v443_v41 = vmul.f32 %v1492_v8, %v2186_v50  ;;  %v444_v33 = vmul.f32 %v1492_v8, %v2189_v51 }
 0x12e   : > { %604 = vst [vmem:[#allocation2 + $0x20] sm:$0xff] %v1279_v38  ;;  %v489_v13 = vmul.f32 %v2239_v26, %v445_v39  ;;  %v490_v34 = vmul.f32 %v2241_v27, %v446_v12 }
 0x12f   : > { %v1494_v35 = vpop.eup %1493  ;;  %603 = vst [vmem:[#allocation2 + $0x40] sm:$0xff] %v1278_v40  ;;  %v487_v36 = vmul.f32 %v2239_v26, %v443_v41  ;;  %v488_v37 = vmul.f32 %v2241_v27, %v444_v33 }
 0x130   : > { %v1496_v42 = vpop.eup %1495  ;;  %v1281_v48 = vpack.c.bf16 %v490_v34, %v489_v13  ;;  %v449_v49 = vmul.f32 %v1494_v35, %v2200_v58  ;;  %v450_v43 = vmul.f32 %v1494_v35, %v2203_v59 }
 0x131   : > { %v1280_v50 = vpack.c.bf16 %v488_v37, %v487_v36  ;;  %v447_v51 = vmul.f32 %v1496_v42, %v2206_v60  ;;  %v448_v44 = vmul.f32 %v1496_v42, %v2209_v61 }
 0x132   : > { %606 = vst [vmem:[#allocation2 + $0x38] sm:$0xff] %v1281_v48  ;;  %v493_v45 = vmul.f32 %v2239_v26, %v449_v49  ;;  %v494_v46 = vmul.f32 %v2241_v27, %v450_v43 }
 0x133   : > { %v1498_v47 = vpop.eup %1497  ;;  %605 = vst [vmem:[#allocation2 + $0x10] sm:$0xff] %v1280_v50  ;;  %v491_v52 = vmul.f32 %v2239_v26, %v447_v51  ;;  %v492_v53 = vmul.f32 %v2241_v27, %v448_v44 }
 0x134   : > { %v1500_v54 = vpop.eup %1499  ;;  %v1283_v58 = vpack.c.bf16 %v494_v46, %v493_v45  ;;  %v453_v59 = vmul.f32 %v1498_v47, %v2220_v10  ;;  %v454_v14 = vmul.f32 %v1498_v47, %v2223_v11 }
 0x135   : > { %v1282_v60 = vpack.c.bf16 %v492_v53, %v491_v52  ;;  %v451_v61 = vmul.f32 %v1500_v54, %v2226_v15  ;;  %v452_v18 = vmul.f32 %v1500_v54, %v2229_v16 }
 0x136   : > { %608 = vst [vmem:[#allocation2 + $0x70] sm:$0xff] %v1283_v58  ;;  %v497_v19 = vmul.f32 %v2239_v26, %v453_v59  ;;  %v498_v55 = vmul.f32 %v2241_v27, %v454_v14 }
 0x137   : > { %607 = vst [vmem:[#allocation2 + $0x60] sm:$0xff] %v1282_v60  ;;  %v495_v20 = vmul.f32 %v2239_v26, %v451_v61  ;;  %v496_v56 = vmul.f32 %v2241_v27, %v452_v18 }
 0x138   : > { %v1285_v57 = vpack.c.bf16 %v498_v55, %v497_v19 }
 0x139   : > { %v1284_v0 = vpack.c.bf16 %v496_v56, %v495_v20 }
 0x13a   : > { %610 = vst [vmem:[#allocation2 + $0x28] sm:$0xff] %v1285_v57 }
 0x13b   : > { %609 = vst [vmem:[#allocation2 + $0x78] sm:$0xff] %v1284_v0 }
 0x13c PF: > { %v1501_v10 = vld [vmem:[%s2067_s3 + $0x74] ss:$8 sps:$4 sm:$0xff]   ;;  %v1503_v11 = vld [vmem:[%s2067_s3 + $0x70] ss:$8 sps:$4 sm:$0xff]   ;;  %v1504_v15 = vld [vmem:[%s2067_s3 + $0x64] ss:$8 sps:$4 sm:$0xff]  }
 0x13d   : > { %899 = vmatprep.subr.bf16.mxu0 %v1501_v10  ;;  %1287 = vmatprep.subr.bf16.mxu1 %v1501_v10  ;;  %v1506_v16 = vld [vmem:[%s2067_s3 + $0x60] ss:$8 sps:$4 sm:$0xff]   ;;  %v1507_v26 = vld [vmem:[%s2067_s3 + $0x54] ss:$8 sps:$4 sm:$0xff]   ;;  %v1509_v27 = vld [vmem:[%s2067_s3 + $0x50] ss:$8 sps:$4 sm:$0xff]  }
 0x13e   : > { %900 = vmatpush1.bf16.msra.mxu0 %v1503_v11  ;;  %1303 = vmatpush1.bf16.msra.mxu1 %v1503_v11  ;;  %v1510_v1 = vld [vmem:[%s2067_s3 + $0x44] ss:$8 sps:$4 sm:$0xff]   ;;  %v1512_v62 = vld [vmem:[%s2067_s3 + $0x40] ss:$8 sps:$4 sm:$0xff]   ;;  %v1513_v2 = vld [vmem:[%s2067_s3 + $0x34] ss:$8 sps:$4 sm:$0xff]  }
 0x13f   : > { %901 = vmatprep.subr.bf16.mxu0 %v1504_v15  ;;  %1288 = vmatprep.subr.bf16.mxu1 %v1504_v15  ;;  %v1515_v5 = vld [vmem:[%s2067_s3 + $0x30] ss:$8 sps:$4 sm:$0xff]   ;;  %v1516_v63 = vld [vmem:[%s2067_s3 + $0x24] ss:$8 sps:$4 sm:$0xff]   ;;  %v1518_v3 = vld [vmem:[%s2067_s3 + $0x20] ss:$8 sps:$4 sm:$0xff]  }
 0x140   : > { %v1519_v4 = vld [vmem:[%s2067_s3 + $0x14] ss:$8 sps:$4 sm:$0xff]   ;;  %v1521_v29 = vld [vmem:[%s2067_s3 + $0x10] ss:$8 sps:$4 sm:$0xff]   ;;  %v1522_v30 = vld [vmem:[%s2067_s3 + $0x4] ss:$8 sps:$4 sm:$0xff]  }
 0x141   : > { %v1551_v6 = vld [vmem:[#allocation2 + $0x34] ss:$-48 sps:$4 sm:$0xff]   ;;  %v613_v35 = vld [vmem:[#allocation2 + $0x58] sm:$0xff]  ;;  %v1549_v37 = vld [vmem:[#allocation2 + $0x30] ss:$-48 sps:$4 sm:$0xff]   ;;  %s2507_s18 = sld [smem:[#allocation14_spill]] }
 0x142   : > { %902 = vmatpush1.bf16.msra.mxu0 %v1506_v16  ;;  %1304 = vmatpush1.bf16.msra.mxu1 %v1506_v16  ;;  %v2320_v28 = vld [vmem:[#allocation2 + $0x40] sm:$0xff]  ;;  %v1527_v22 = vld [vmem:[%s2067_s3 + $0xf0] ss:$8 sps:$4 sm:$0xff]   ;;  %v617_v45 = vld [vmem:[#allocation2 + $0x8] sm:$0xff]  ;;  %s2508_s10 = sld [smem:[#allocation15_spill]]  ;;  %s1061_s22 = sshll.u32 %s2076_s8, 4  ;;  %s2383_s22 = int_to_ptr.vmem [resolvable:$true] %s1061_s22 }
 0x143   : > { %903 = vmatprep.subr.bf16.mxu0 %v1507_v26  ;;  %1289 = vmatprep.subr.bf16.mxu1 %v1507_v26  ;;  %v2323_v9 = vld [vmem:[#allocation2 + $0x20] sm:$0xff]  ;;  %v1533_v32 = vld [vmem:[%s2067_s3 + $0xd0] ss:$8 sps:$4 sm:$0xff]   ;;  %v618_v46 = vld [vmem:[#allocation2 + $0x48] sm:$0xff]  ;;  %s2509_s27 = sld [smem:[#allocation22_spill]]  ;;  %s2391_s6 = scalar_lea.sflag [#allocation5], %s251_s1 }
 0x144   : > { %v1221_v31 = vcombine.high %v2320_v28, %v2323_v9  ;;  %931 = vmatprep.mubr.bf16.mxu0 %v1551_v6  ;;  %v1524_v17 = vld [vmem:[%s2067_s3] ss:$8 sps:$4 sm:$0xff]   ;;  %v1525_v21 = vld [vmem:[%s2067_s3 + $0xf4] ss:$8 sps:$4 sm:$0xff]   ;;  %v1528_v23 = vld [vmem:[%s2067_s3 + $0xe4] ss:$8 sps:$4 sm:$0xff]   ;;  %v1220_v42 = vcombine.low %v2320_v28, %v2323_v9  ;;  %v1219_v53 = vcombine.high %v617_v45, %v618_v46  ;;  %v1218_v58 = vcombine.low %v617_v45, %v618_v46 }
 0x145   : > { %v1530_v24 = vld [vmem:[%s2067_s3 + $0xe0] ss:$8 sps:$4 sm:$0xff]   ;;  %v1531_v25 = vld [vmem:[%s2067_s3 + $0xd4] ss:$8 sps:$4 sm:$0xff]   ;;  %v1534_v7 = vld [vmem:[%s2067_s3 + $0xc4] ss:$8 sps:$4 sm:$0xff]  }
 0x146   : > { %904 = vmatpush1.bf16.msra.mxu0 %v1509_v27  ;;  %1305 = vmatpush1.bf16.msra.mxu1 %v1509_v27  ;;  %v1536_v8 = vld [vmem:[%s2067_s3 + $0xc0] ss:$8 sps:$4 sm:$0xff]   ;;  %v1537_v38 = vld [vmem:[%s2067_s3 + $0xb4] ss:$8 sps:$4 sm:$0xff]   ;;  %v1539_v39 = vld [vmem:[%s2067_s3 + $0xb0] ss:$8 sps:$4 sm:$0xff]  }
 0x147   : > { %905 = vmatprep.subr.bf16.mxu0 %v1510_v1  ;;  %1290 = vmatprep.subr.bf16.mxu1 %v1510_v1  ;;  %v1540_v12 = vld [vmem:[%s2067_s3 + $0xa4] ss:$8 sps:$4 sm:$0xff]   ;;  %v1542_v40 = vld [vmem:[%s2067_s3 + $0xa0] ss:$8 sps:$4 sm:$0xff]   ;;  %v1543_v41 = vld [vmem:[%s2067_s3 + $0x94] ss:$8 sps:$4 sm:$0xff]  }
 0x148   : > { %971 = vmatprep.mubr.bf16.mxu1 %v1221_v31  ;;  %v1545_v33 = vld [vmem:[%s2067_s3 + $0x90] ss:$8 sps:$4 sm:$0xff]   ;;  %v1546_v13 = vld [vmem:[%s2067_s3 + $0x84] ss:$8 sps:$4 sm:$0xff]   ;;  %v1548_v34 = vld [vmem:[%s2067_s3 + $0x80] ss:$8 sps:$4 sm:$0xff]  }
 0x149   : > { %v614_v36 = vld [vmem:[#allocation2 + $0x18] sm:$0xff]  ;;  %v1555_v51 = vld [vmem:[#allocation2 + $0x54] ss:$24 sps:$4 sm:$0xff]   ;;  %v1559_v47 = vld [vmem:[#allocation2 + $0x50] ss:$24 sps:$4 sm:$0xff]   ;;  %s1262_s7 = sshll.u32 %s2507_s18, 1 }
 0x14a   : > { %906 = vmatpush1.bf16.msra.mxu0 %v1512_v62  ;;  %1306 = vmatpush1.bf16.msra.mxu1 %v1512_v62  ;;  %v1215_v48 = vcombine.high %v613_v35, %v614_v36  ;;  %v1552_v49 = vld [vmem:[#allocation2 + $0x14] ss:$40 sps:$4 sm:$0xff]   ;;  %v1214_v43 = vcombine.low %v613_v35, %v614_v36  ;;  %v1554_v50 = vld [vmem:[#allocation2 + $0x10] ss:$40 sps:$4 sm:$0xff]   ;;  %s1286_s26 = sshll.u32 %s2508_s10, 7  ;;  %s1646_s3 = scalar_lea.vmem %s2383_s22, 4096 }
 0x14b   : > { %907 = vmatprep.subr.bf16.mxu0 %v1513_v2  ;;  %1291 = vmatprep.subr.bf16.mxu1 %v1513_v2  ;;  %v1557_v44 = vld [vmem:[#allocation2 + $0x64] ss:$16 sps:$4 sm:$0xff]   ;;  %v1560_v52 = vld [vmem:[#allocation2 + $0x60] ss:$16 sps:$4 sm:$0xff]   ;;  %v1561_v54 = vld [vmem:[#allocation2 + $0x7c] ss:$-80 sps:$4 sm:$0xff]   ;;  %s1058_s29 = sadd.s32 %s1286_s26, %s1262_s7  ;;  %p1647_p2 = scmp.ne.s32.totalorder %s2383_s22, %s1646_s3 }
 0x14c   : > { %v1563_v59 = vld [vmem:[#allocation2 + $0x78] ss:$-80 sps:$4 sm:$0xff]   ;;  %s1264_s4 = sshll.u32 %s1058_s29, 7  ;;  %p2510_p9 = scmp.ne.s32.totalorder %s2495_s15, 0 }
 0x14d   : > { %s2381_s24 = scalar_lea.hbm %s2509_s27, %s1264_s4  ;;  %s1808_s21 = smov [#allocation9]  }
 0x14e   : > { %908 = vmatpush1.bf16.msra.mxu0 %v1515_v5  ;;  %1307 = vmatpush1.bf16.msra.mxu1 %v1515_v5  ;;  %p1648_p8 = pnand %p1647_p2, %p2510_p9  ;;  %s1650_s5 = sshll.u32 %s1808_s21, 4  ;;  %s1651_s5 = int_to_ptr.vmem [resolvable:$false] %s1650_s5 }
 0x14f   : > { %909 = vmatprep.subr.bf16.mxu0 %v1516_v63  ;;  %1292 = vmatprep.subr.bf16.mxu1 %v1516_v63  ;;  %s1652_s18 = scalar_lea.vmem %s1651_s5, 8192  ;;  %p1653_p13 = scmp.lt.s32.totalorder %s2383_s22, %s1651_s5 }
 0x150   : > { %p1649_p1 = pneg %p1648_p8  ;;  %p1654_p10 = scmp.lt.s32.totalorder %s1652_s18, %s1646_s3 }
 0x152   : > { %910 = vmatpush1.bf16.msra.mxu0 %v1518_v3  ;;  %1308 = vmatpush1.bf16.msra.mxu1 %v1518_v3  ;;  %p1655_p6 = por %p1654_p10, %p1653_p13 }
 0x153   : > { %911 = vmatprep.subr.bf16.mxu0 %v1519_v4  ;;  %1293 = vmatprep.subr.bf16.mxu1 %v1519_v4 }
 0x154   : > { %p1656_p3 = pnand %p1655_p6, %p1649_p1 }
 0x156   : > { %912 = vmatpush1.bf16.msra.mxu0 %v1521_v29  ;;  %1309 = vmatpush1.bf16.msra.mxu1 %v1521_v29 }
 0x157   : > { %913 = vmatprep.subr.bf16.mxu0 %v1522_v30  ;;  %1294 = vmatprep.subr.bf16.mxu1 %v1522_v30 }
 0x15a   : > { %914 = vmatpush1.bf16.msra.mxu0 %v1524_v17  ;;  %1310 = vmatpush1.bf16.msra.mxu1 %v1524_v17 }
 0x15b   : > { %915 = vmatprep.subr.bf16.mxu0 %v1525_v21  ;;  %1295 = vmatprep.subr.bf16.mxu1 %v1525_v21 }
 0x15e   : > { %916 = vmatpush2.bf16.msra.mxu0 %v1527_v22  ;;  %1311 = vmatpush2.bf16.msra.mxu1 %v1527_v22 }
 0x15f   : > { %917 = vmatprep.subr.bf16.mxu0 %v1528_v23  ;;  %1296 = vmatprep.subr.bf16.mxu1 %v1528_v23 }
 0x162   : > { %918 = vmatpush2.bf16.msra.mxu0 %v1530_v24  ;;  %1312 = vmatpush2.bf16.msra.mxu1 %v1530_v24 }
 0x163   : > { %919 = vmatprep.subr.bf16.mxu0 %v1531_v25  ;;  %1297 = vmatprep.subr.bf16.mxu1 %v1531_v25 }
 0x166   : > { %920 = vmatpush2.bf16.msra.mxu0 %v1533_v32  ;;  %1313 = vmatpush2.bf16.msra.mxu1 %v1533_v32 }
 0x167   : > { %921 = vmatprep.subr.bf16.mxu0 %v1534_v7  ;;  %1298 = vmatprep.subr.bf16.mxu1 %v1534_v7 }
 0x16a   : > { %922 = vmatpush2.bf16.msra.mxu0 %v1536_v8  ;;  %1314 = vmatpush2.bf16.msra.mxu1 %v1536_v8 }
 0x16b   : > { %923 = vmatprep.subr.bf16.mxu0 %v1537_v38  ;;  %1299 = vmatprep.subr.bf16.mxu1 %v1537_v38 }
 0x16e   : > { %924 = vmatpush2.bf16.msra.mxu0 %v1539_v39  ;;  %1315 = vmatpush2.bf16.msra.mxu1 %v1539_v39 }
 0x16f   : > { %925 = vmatprep.subr.bf16.mxu0 %v1540_v12  ;;  %1300 = vmatprep.subr.bf16.mxu1 %v1540_v12 }
 0x172   : > { %926 = vmatpush2.bf16.msra.mxu0 %v1542_v40  ;;  %1316 = vmatpush2.bf16.msra.mxu1 %v1542_v40 }
 0x173   : > { %927 = vmatprep.subr.bf16.mxu0 %v1543_v41  ;;  %1301 = vmatprep.subr.bf16.mxu1 %v1543_v41 }
 0x176   : > { %928 = vmatpush2.bf16.msra.mxu0 %v1545_v33  ;;  %1317 = vmatpush2.bf16.msra.mxu1 %v1545_v33 }
 0x177   : > { %929 = vmatprep.subr.bf16.mxu0 %v1546_v13  ;;  %1302 = vmatprep.subr.bf16.mxu1 %v1546_v13 }
 0x17a   : > { %930 = vmatpush2.bf16.msra.mxu0 %v1548_v34  ;;  %1318 = vmatpush2.bf16.msra.mxu1 %v1548_v34 }
 0x17d   : > { %932 = vmatmul.mubr.bf16.vlgmr.msra.gmra.mxu0 %v1549_v37  ;;  %972 = vmatmul.mubr.bf16.vlgmr.msra.gmra.mxu1 %v1220_v42 }
 0x17e   : > { %941 = vmatprep.mubr.bf16.mxu0 %v1215_v48  ;;  %981 = vmatprep.mubr.bf16.mxu1 %v1552_v49 }
 0x185   : > { %942 = vmatmul.mubr.bf16.gmra.mxu0 %v1214_v43  ;;  %982 = vmatmul.mubr.bf16.gmra.mxu1 %v1554_v50 }
 0x186   : > { %951 = vmatprep.mubr.bf16.mxu0 %v1555_v51  ;;  %991 = vmatprep.mubr.bf16.mxu1 %v1557_v44 }
 0x18d   : > { %952 = vmatmul.mubr.bf16.gmra.mxu0 %v1559_v47  ;;  %992 = vmatmul.mubr.bf16.gmra.mxu1 %v1560_v52 }
 0x18e   : > { %961 = vmatprep.mubr.bf16.mxu0 %v1219_v53  ;;  %1001 = vmatprep.mubr.bf16.mxu1 %v1561_v54 }
 0x195   : > { %962 = vmatmul.mubr.bf16.gmra.mxu0 %v1218_v58  ;;  %1002 = vmatmul.mubr.bf16.gmra.mxu1 %v1563_v59 }
 0x23d   : > { %v933_v14 = vpop.f32.mrf.mxu0  ;;  %v973_v60 = vpop.f32.mrf.mxu1 }
 0x23e   : > { %1012 = vst [vmem:[%s2076_s8] sm:$0xff] %v933_v14  ;;  %1028 = vst [vmem:[%s2076_s8 + $0x80] sm:$0xff] %v973_v60 }
 0x23f   : > { %v935_v61 = vpop.f32.mrf.mxu0  ;;  %v975_v18 = vpop.f32.mrf.mxu1 }
 0x240   : > { %1013 = vst [vmem:[%s2076_s8 + $0x8] sm:$0xff] %v935_v61  ;;  %1029 = vst [vmem:[%s2076_s8 + $0x88] sm:$0xff] %v975_v18 }
 0x241   : > { %v937_v19 = vpop.f32.mrf.mxu0  ;;  %v977_v55 = vpop.f32.mrf.mxu1 }
 0x242   : > { %1014 = vst [vmem:[%s2076_s8 + $0x10] sm:$0xff] %v937_v19  ;;  %1030 = vst [vmem:[%s2076_s8 + $0x90] sm:$0xff] %v977_v55 }
 0x243   : > { %v939_v20 = vpop.f32.mrf.mxu0  ;;  %v979_v56 = vpop.f32.mrf.mxu1 }
 0x244   : > { %1015 = vst [vmem:[%s2076_s8 + $0x18] sm:$0xff] %v939_v20  ;;  %1031 = vst [vmem:[%s2076_s8 + $0x98] sm:$0xff] %v979_v56 }
 0x245   : > { %v943_v57 = vpop.f32.mrf.mxu0  ;;  %v983_v0 = vpop.f32.mrf.mxu1 }
 0x246   : > { %1016 = vst [vmem:[%s2076_s8 + $0x20] sm:$0xff] %v943_v57  ;;  %1032 = vst [vmem:[%s2076_s8 + $0xa0] sm:$0xff] %v983_v0 }
 0x247   : > { %v945_v10 = vpop.f32.mrf.mxu0  ;;  %v985_v11 = vpop.f32.mrf.mxu1 }
 0x248   : > { %1017 = vst [vmem:[%s2076_s8 + $0x28] sm:$0xff] %v945_v10  ;;  %1033 = vst [vmem:[%s2076_s8 + $0xa8] sm:$0xff] %v985_v11 }
 0x249   : > { %v947_v15 = vpop.f32.mrf.mxu0  ;;  %v987_v16 = vpop.f32.mrf.mxu1 }
 0x24a   : > { %1018 = vst [vmem:[%s2076_s8 + $0x30] sm:$0xff] %v947_v15  ;;  %1034 = vst [vmem:[%s2076_s8 + $0xb0] sm:$0xff] %v987_v16 }
 0x24b   : > { %v949_v26 = vpop.f32.mrf.mxu0  ;;  %v989_v27 = vpop.f32.mrf.mxu1 }
 0x24c   : > { %1019 = vst [vmem:[%s2076_s8 + $0x38] sm:$0xff] %v949_v26  ;;  %1035 = vst [vmem:[%s2076_s8 + $0xb8] sm:$0xff] %v989_v27 }
 0x24d   : > { %v953_v1 = vpop.f32.mrf.mxu0  ;;  %v993_v62 = vpop.f32.mrf.mxu1 }
 0x24e   : > { %1020 = vst [vmem:[%s2076_s8 + $0x40] sm:$0xff] %v953_v1  ;;  %1036 = vst [vmem:[%s2076_s8 + $0xc0] sm:$0xff] %v993_v62 }
 0x24f   : > { %v955_v2 = vpop.f32.mrf.mxu0  ;;  %v995_v5 = vpop.f32.mrf.mxu1 }
 0x250   : > { %1021 = vst [vmem:[%s2076_s8 + $0x48] sm:$0xff] %v955_v2  ;;  %1037 = vst [vmem:[%s2076_s8 + $0xc8] sm:$0xff] %v995_v5 }
 0x251   : > { %v957_v63 = vpop.f32.mrf.mxu0  ;;  %v997_v3 = vpop.f32.mrf.mxu1 }
 0x252   : > { %1022 = vst [vmem:[%s2076_s8 + $0x50] sm:$0xff] %v957_v63  ;;  %1038 = vst [vmem:[%s2076_s8 + $0xd0] sm:$0xff] %v997_v3 }
 0x253   : > { %v959_v4 = vpop.f32.mrf.mxu0  ;;  %v999_v6 = vpop.f32.mrf.mxu1 }
 0x254   : > { %1023 = vst [vmem:[%s2076_s8 + $0x58] sm:$0xff] %v959_v4  ;;  %1039 = vst [vmem:[%s2076_s8 + $0xd8] sm:$0xff] %v999_v6 }
 0x255   : > { %v963_v28 = vpop.f32.mrf.mxu0  ;;  %v1003_v29 = vpop.f32.mrf.mxu1 }
 0x256   : > { %1024 = vst [vmem:[%s2076_s8 + $0x60] sm:$0xff] %v963_v28  ;;  %1040 = vst [vmem:[%s2076_s8 + $0xe0] sm:$0xff] %v1003_v29 }
 0x257   : > { %v965_v9 = vpop.f32.mrf.mxu0  ;;  %v1005_v30 = vpop.f32.mrf.mxu1 }
 0x258   : > { %1025 = vst [vmem:[%s2076_s8 + $0x68] sm:$0xff] %v965_v9  ;;  %1041 = vst [vmem:[%s2076_s8 + $0xe8] sm:$0xff] %v1005_v30 }
 0x259   : > { %v967_v31 = vpop.f32.mrf.mxu0  ;;  %v1007_v17 = vpop.f32.mrf.mxu1 }
 0x25a   : > { %1026 = vst [vmem:[%s2076_s8 + $0x70] sm:$0xff] %v967_v31  ;;  %1042 = vst [vmem:[%s2076_s8 + $0xf0] sm:$0xff] %v1007_v17 }
 0x25b   : > { %v969_v21 = vpop.f32.mrf.mxu0  ;;  %v1009_v22 = vpop.f32.mrf.mxu1 }
 0x25c   : > { %1027 = vst [vmem:[%s2076_s8 + $0x78] sm:$0xff] %v969_v21  ;;  %1043 = vst [vmem:[%s2076_s8 + $0xf8] sm:$0xff] %v1009_v22 }
 0x25d   : > { %1659 = shalt.err (!%p1656_p3)
}
 0x25e   : > { %s1660_s1 = scalar_lea.hbm %s2381_s24, 4096  ;;  %s1664_s7 = scalar_lea.hbm %s2509_s27, 32768 }
 0x25f   : > { %p1661_p7 = scmp.ne.s32.totalorder %s2381_s24, %s1660_s1  ;;  %p1665_p4 = scmp.lt.s32.totalorder %s2381_s24, %s2509_s27 }
 0x260   : > { %p1666_p12 = scmp.lt.s32.totalorder %s1664_s7, %s1660_s1 }
 0x261   : > { %p1662_p11 = pnand %p1661_p7, %p2510_p9 }
 0x262   : > { %p1667_p0 = por %p1666_p12, %p1665_p4 }
 0x263   : > { %p1663_p5 = pneg %p1662_p11 }
 0x265   : > { %p1668_p2 = pnand %p1667_p0, %p1663_p5 }
 0x267   : > { %1671 = shalt.err (!%p1668_p2)
}
 0x268   : > { %s1809_s4 = smov 256   ;;  %s1810_s0 = smov 1024  }
 0x269   : > { %s1811_s9 = smov 16  }
 0x26a   : > { %1327 = dma.vmem_to_hbm [thread:$0]  (%p2510_p9), %s2383_s22, 4096, %s2381_s24, %s2391_s6, %s1809_s4, %s1810_s0, %s1811_s9  }
 0x26b PF: > { %p1347_p8 = scmp.ge.s32.totalorder %s1798_s25, 2  ;;  %s1076_s3 = sand.u32 1, %s1746_s12  }
 0x26c   : > { %p2511_p1 = scmp.ne.s32.totalorder %s2496_s28, 0  ;;  %s1077_s21 = scalar_lea.sflag [#allocation5], %s1076_s3 }
 0x26e   : > { %p1341_p13 = pnand %p1347_p8, %p2511_p1 }
 0x270   : > { %p1342_p10 = pneg %p1341_p13 }
 0x272   : > { %1741 = dma.done.wait (%p1342_p10), %s1077_s21, 4096  }
 0x273   : > { %1743 = vsyncadd (%p1342_p10), %s1077_s21, 4294963200  ;;  %s20_s25 = sadd.s32 1, %s1798_s25   ;;  %s2513_s28 = sld [smem:[#allocation19_spill]] }
 0x274   : > { %p2419_p6 = scmp.ge.s32.totalorder %s20_s25, 10   ;;  %s2514_s22 = sld [smem:[#allocation16_spill]] }
 0x275   : > { %s2515_s24 = sld [smem:[#allocation17_spill]]  ;;  %s2517_s12 = smov %s1750_s13 }
 0x276   : > { %s2516_s6 = sld [smem:[#allocation18_spill]]  ;;  %s2518_s13 = smov %s1754_s14 }
 0x277   : > { %s2519_s14 = smov %s1998_s30  ;;  %s2520_s15 = smov %s1762_s16 }
 0x278   : > { %s2521_s16 = smov %s1766_s17  ;;  %s2522_s17 = smov %s1967_s11 }
 0x279   : > { %s2523_s18 = smov %s1774_s19  ;;  %s2524_s19 = smov %s1778_s20 }
 0x27a   : > { %s2525_s20 = smov %s2513_s28  ;;  %s2526_s21 = smov %s1790_s23 }
 0x27b   : > { %s2527_s23 = smov %s2515_s24  ;;  %19 = sbr.rel (!%p2419_p6) target bundleno = 15 (0xf), region = 96 }
 0x27c   : > { %s2528_s24 = smov %s2516_s6 }
 0x280   :  { %1082 = vsyncpa [#allocation4], 1 }
 0x281   :  { %1084 = vsyncpa [#allocation4 + $0x1], 1 }
 0x282   :  { %1085 = vsyncpa [#allocation7], 1 }
 0x283   :  { %1086 = vsyncpa [#allocation5], 1 }
 0x284   :  { %1088 = vsyncpa [#allocation5 + $0x1], 1 }

</bundles_post_ra>
